<compile_context>
chip_gen: v5e
topology: v5e:2x2
jax: 0.10.0
libtpu: 0.0.40
codegen_flags: <defaults>
</compile_context>

<pallas_src>
import jax
import jax.numpy as jnp
from jax import lax
from jax.experimental import pallas as pl
from jax.experimental.pallas import tpu as pltpu

_TM_TARGET = 1024        # query-tile rows target
_TN_TARGET = 1024        # key-tile rows / output lane width target (lane-dense stores)
_TILE_BUDGET = 14 << 20  # double-buffered working-set cap (fits v5e 16 MiB default scoped VMEM)
_VMEM_LIMIT = 32 << 20   # explicit scoped-VMEM limit (safe on v5e/v6e 128 MiB, v7x 64 MiB physical)


def _round_up(x, m):
    return (x + m - 1) // m * m


def _footprint(bb, tm, tn, feat, qbytes, kbytes, has_mask):
    """Double-buffered VMEM bytes for one grid step."""
    b = 2 * bb * (tm * feat * qbytes + tn * feat * kbytes + tm * tn * 4)
    if has_mask:
        b += 2 * bb * tm * tn          # worst case: dense int8 mask tile
    return b


def _fit_caps(feat, qbytes, kbytes, has_mask):
    """Shrink (tm, tn) targets until the double-buffered tile set fits the budget."""
    tm, tn = _TM_TARGET, _TN_TARGET
    while (_footprint(1, tm, tn, feat, qbytes, kbytes, has_mask) > _TILE_BUDGET
           and (tm > 8 or tn > 128)):
        if tm > 8 and (tm * qbytes >= tn * kbytes or tn <= 128):
            tm //= 2
        else:
            tn //= 2
    return max(tm, 8), max(tn, 128)


def _choose_tile(dim, align, cap):
    """Pick a tile for `dim`.

    If the whole dim fits under `cap`, use it directly (block == full array
    dim: no padding, no post-kernel slice). Otherwise use the largest multiple
    of `align` <= cap that divides round_up(dim, align), so padding is at most
    align-1 elements instead of a full tile.
    """
    if dim <= cap:
        return dim, dim
    padded = _round_up(dim, align)
    best = align
    t = align
    while t <= cap:
        if padded % t == 0:
            best = t
        t += align
    return best, padded


# ---------------------------------------------------------------------------
# Kernels
# ---------------------------------------------------------------------------
def _score_kernel(q_ref, k_ref, o_ref):
    # q_ref: (tm, F)   k_ref: (tn, F)   o_ref: (tm, tn)
    s = lax.dot_general(q_ref[...], k_ref[...],
                        dimension_numbers=(((1,), (1,)), ((), ())),
                        preferred_element_type=jnp.float32)
    o_ref[...] = s.astype(o_ref.dtype)


def _score_mask_kernel(q_ref, k_ref, m_ref, o_ref):
    # m_ref: (tm|1, tn|1) int8 -- broadcasts against s inside the kernel
    s = lax.dot_general(q_ref[...], k_ref[...],
                        dimension_numbers=(((1,), (1,)), ((), ())),
                        preferred_element_type=jnp.float32)
    s = jnp.where(m_ref[...] == 0, jnp.float32(-1e9), s)
    o_ref[...] = s.astype(o_ref.dtype)


def _score_kernel_batched(q_ref, k_ref, o_ref):
    # q_ref: (bb, tm, F)   k_ref: (bb, tn, F)   o_ref: (bb, tm, tn)
    s = jnp.einsum("btf,bsf->bts", q_ref[...], k_ref[...],
                   preferred_element_type=jnp.float32)
    o_ref[...] = s.astype(o_ref.dtype)


def _score_mask_kernel_batched(q_ref, k_ref, m_ref, o_ref):
    s = jnp.einsum("btf,bsf->bts", q_ref[...], k_ref[...],
                   preferred_element_type=jnp.float32)
    s = jnp.where(m_ref[...] == 0, jnp.float32(-1e9), s)
    o_ref[...] = s.astype(o_ref.dtype)


# ---------------------------------------------------------------------------
# pallas_call wrapper
# ---------------------------------------------------------------------------
@jax.jit
def _attention_pallas(query, key, mask):
    B, T, F = query.shape
    S = key.shape[1]
    out_dtype = jnp.promote_types(query.dtype, key.dtype)
    has_mask = mask is not None
    qbytes = jnp.dtype(query.dtype).itemsize
    kbytes = jnp.dtype(key.dtype).itemsize

    # VMEM-budgeted, (8,128)-aligned tiles; full dims used directly when they fit.
    tm_cap, tn_cap = _fit_caps(F, qbytes, kbytes, has_mask)
    tm, T_pad = _choose_tile(T, 8, tm_cap)
    tn, S_pad = _choose_tile(S, 128, tn_cap)
    t_tiles, s_tiles = T_pad // tm, S_pad // tn

    q, k = query, key
    if T_pad != T:
        q = jnp.pad(q, ((0, 0), (0, T_pad - T), (0, 0)))
    if S_pad != S:
        k = jnp.pad(k, ((0, 0), (0, S_pad - S), (0, 0)))

    # Small-problem path: T and S both fit in one block -> fold several batch
    # elements per grid step to amortize the per-step (~0.35 us) overhead.
    bb = 1
    if t_tiles == 1 and s_tiles == 1 and B > 1:
        for cand in range(B, 1, -1):
            if (B % cand == 0 and
                    _footprint(cand, tm, tn, F, qbytes, kbytes, has_mask)
                    <= _TILE_BUDGET):
                bb = cand
                break
    batched = bb > 1

    grid = (B // bb, t_tiles, s_tiles)
    if batched:
        q_spec = pl.BlockSpec((bb, tm, F), lambda b, i, j: (b, i, 0))
        k_spec = pl.BlockSpec((bb, tn, F), lambda b, i, j: (b, j, 0))
        o_spec = pl.BlockSpec((bb, tm, tn), lambda b, i, j: (b, i, j))
    else:
        q_spec = pl.BlockSpec((pl.Squeezed(), tm, F), lambda b, i, j: (b, i, 0))
        k_spec = pl.BlockSpec((pl.Squeezed(), tn, F), lambda b, i, j: (b, j, 0))
        o_spec = pl.BlockSpec((pl.Squeezed(), tm, tn), lambda b, i, j: (b, i, j))

    out_shape = jax.ShapeDtypeStruct((B, T_pad, S_pad), out_dtype)
    cparams = pltpu.CompilerParams(
        # No reduction axis / carried accumulator: every grid step writes its
        # own output block, so all axes can be sharded across v7x's 2 TCs.
        dimension_semantics=("parallel", "parallel", "parallel"),
        vmem_limit_bytes=_VMEM_LIMIT,
    )

    if has_mask:
        # torch semantics: masked_fill(mask == 0, ...) -> "keep" wherever nonzero.
        m = (mask != 0).astype(jnp.int8)
        mb, mt, ms = m.shape
        has_b, has_t, has_s = mb != 1, mt != 1, ms != 1
        pad_t = (T_pad - T) if has_t else 0
        pad_s = (S_pad - S) if has_s else 0
        if pad_t or pad_s:
            m = jnp.pad(m, ((0, 0), (0, pad_t), (0, pad_s)), constant_values=1)

        # Broadcast axes stay size-1 in HBM (no densification); broadcast via
        # index_map + in-kernel jnp.where.
        def m_index(b, i, j, hb=has_b, ht=has_t, hs=has_s):
            return (b if hb else 0, i if ht else 0, j if hs else 0)

        if batched:
            m_block = (bb if has_b else 1,
                       tm if has_t else 1,
                       tn if has_s else 1)
        else:
            m_block = (pl.Squeezed(),
                       tm if has_t else 1,
                       tn if has_s else 1)
        m_spec = pl.BlockSpec(m_block, m_index)

        kern = _score_mask_kernel_batched if batched else _score_mask_kernel
        score = pl.pallas_call(
            kern,
            out_shape=out_shape,
            grid_spec=pltpu.PrefetchScalarGridSpec(
                num_scalar_prefetch=0, grid=grid,
                in_specs=[q_spec, k_spec, m_spec], out_specs=o_spec),
            compiler_params=cparams,
        )(q, k, m)
    else:
        kern = _score_kernel_batched if batched else _score_kernel
        score = pl.pallas_call(
            kern,
            out_shape=out_shape,
            grid_spec=pltpu.PrefetchScalarGridSpec(
                num_scalar_prefetch=0, grid=grid,
                in_specs=[q_spec, k_spec], out_specs=o_spec),
            compiler_params=cparams,
        )(q, k)

    if T_pad != T or S_pad != S:
        score = score[:, :T, :S]
    return score


def attention(query, key, value=None, mask=None):
    """Pallas equivalent of the PyTorch Attention.forward.

    query: [B, target_len, feature]
    key:   [B, seq_len,    feature]
    mask:  optional, broadcastable to [B, target_len, seq_len]
    Returns score with torch-style .squeeze(1) applied.
    `value` is accepted but unused, matching the PyTorch module.
    """
    query = jnp.asarray(query)
    key = jnp.asarray(key)
    if mask is not None:
        m = jnp.asarray(mask)
        while m.ndim < 3:
            m = m[None]
        score = _attention_pallas(query, key, m)
    else:
        score = _attention_pallas(query, key, None)
    # torch .squeeze(1): drop axis 1 only when it has size 1
    if score.shape[1] == 1:
        score = jnp.squeeze(score, axis=1)
    return score


if __name__ == "__main__":
    rng = jax.random.PRNGKey(0)
    k1, k2, k3, k4, k5, k6, k7 = jax.random.split(rng, 7)

    # Small shapes: batched-block path (grid folds B per step, no padding).
    B, T, S, F = 2, 8, 8, 32
    query = jax.random.normal(k1, (B, T, F), dtype=jnp.float32)
    key = jax.random.normal(k2, (B, S, F), dtype=jnp.float32)
    mask_full = (jax.random.uniform(k3, (B, T, S)) > 0.3).astype(jnp.int32)
    mask_bcast = (jax.random.uniform(k4, (B, 1, S)) > 0.3).astype(jnp.int32)

    score_plain = jax.block_until_ready(attention(query, key))
    score_masked = jax.block_until_ready(attention(query, key, mask=mask_full))
    score_bmask = jax.block_until_ready(attention(query, key, mask=mask_bcast))

    ref = jnp.einsum("btf,bsf->bts", query, key)
    ref_masked = jnp.where(mask_full == 0, -1e9, ref)
    ref_bmask = jnp.where(jnp.broadcast_to(mask_bcast, (B, T, S)) == 0, -1e9, ref)

    assert score_plain.shape == (B, T, S)
    assert jnp.allclose(score_plain, ref, atol=1e-4, rtol=1e-4)
    assert jnp.allclose(score_masked, ref_masked, atol=1e-4, rtol=1e-4)
    assert jnp.allclose(score_bmask, ref_bmask, atol=1e-4, rtol=1e-4)

    # Medium shape: tiled squeezed path (S split into lane-dense 640-wide tiles,
    # no padding / slicing, mask broadcast over B and T without densification).
    B2, T2, S2, F2 = 2, 8, 2560, 32
    q2 = jax.random.normal(k5, (B2, T2, F2), dtype=jnp.float32)
    key2 = jax.random.normal(k6, (B2, S2, F2), dtype=jnp.float32)
    m2 = (jax.random.uniform(k7, (1, 1, S2)) > 0.3).astype(jnp.float32)

    score2 = jax.block_until_ready(attention(q2, key2, mask=m2))
    ref2 = jnp.einsum("btf,bsf->bts", q2, key2)
    ref2 = jnp.where(jnp.broadcast_to(m2, (B2, T2, S2)) == 0, -1e9, ref2)
    assert score2.shape == (B2, T2, S2)
    assert jnp.allclose(score2, ref2, atol=1e-3, rtol=1e-3)

    print("KERNEL_OK")
</pallas_src>

<mosaic_0001>
module attributes {stable_mosaic.version = 11 : i64} {
  func.func @_score_kernel_batched(%arg0: i32, %arg1: i32, %arg2: i32, %arg3: memref<2x8x32xf32, #tpu.memory_space<vmem>>, %arg4: memref<2x8x32xf32, #tpu.memory_space<vmem>>, %arg5: memref<2x8x8xf32, #tpu.memory_space<vmem>>) attributes {dimension_semantics = [#tpu.dimension_semantics<parallel>, #tpu.dimension_semantics<parallel>, #tpu.dimension_semantics<parallel>], iteration_bounds = array<i64: 1, 1, 1>, scalar_prefetch = 0 : i64, scratch_operands = 0 : i64, tpu.core_type = #tpu.core_type<tc>, window_params = [{transform_indices = @transform_0, window_bounds = array<i64: 2, 8, 32>}, {transform_indices = @transform_1, window_bounds = array<i64: 2, 8, 32>}, {transform_indices = @transform_2, window_bounds = array<i64: 2, 8, 8>}]} {
    %c0 = arith.constant 0 : index
    %c0_0 = arith.constant 0 : index
    %c0_1 = arith.constant 0 : index
    %0 = vector.load %arg3[%c0, %c0_0, %c0_1] : memref<2x8x32xf32, #tpu.memory_space<vmem>>, vector<2x8x32xf32>
    %c0_2 = arith.constant 0 : index
    %c0_3 = arith.constant 0 : index
    %c0_4 = arith.constant 0 : index
    %1 = vector.load %arg4[%c0_2, %c0_3, %c0_4] : memref<2x8x32xf32, #tpu.memory_space<vmem>>, vector<2x8x32xf32>
    "tpu.trace_start"() <{level = 10 : i32, message = "btf,bsf->bts"}> : () -> ()
    %cst = arith.constant dense<0.000000e+00> : vector<2x8x8xf32>
    %2 = tpu.matmul %0, %1, %cst {dimension_numbers = #tpu.dot_dimension_numbers<[2], [2], [1], [1], [0, 0, 0, 1, 1, 1], [0], [0]>} : vector<2x8x32xf32>, vector<2x8x32xf32>, vector<2x8x8xf32> -> vector<2x8x8xf32>
    "tpu.trace_stop"() : () -> ()
    %c0_5 = arith.constant 0 : index
    %c0_6 = arith.constant 0 : index
    %c0_7 = arith.constant 0 : index
    %3 = vector.load %arg5[%c0_5, %c0_6, %c0_7] : memref<2x8x8xf32, #tpu.memory_space<vmem>>, vector<2x8x8xf32>
    tpu.vector_store %arg5[%c0_5, %c0_6, %c0_7], %2 {strides = array<i32>} : memref<2x8x8xf32, #tpu.memory_space<vmem>>, vector<2x8x8xf32>,
    return
  }
  func.func @transform_0(%arg0: i32, %arg1: i32, %arg2: i32) -> (i32, i32, i32) {
    %c0_i32 = arith.constant 0 : i32
    %c0_i32_0 = arith.constant 0 : i32
    return %arg0, %arg1, %c0_i32 : i32, i32, i32
  }
  func.func @transform_1(%arg0: i32, %arg1: i32, %arg2: i32) -> (i32, i32, i32) {
    %c0_i32 = arith.constant 0 : i32
    %c0_i32_0 = arith.constant 0 : i32
    return %arg0, %arg2, %c0_i32 : i32, i32, i32
  }
  func.func @transform_2(%arg0: i32, %arg1: i32, %arg2: i32) -> (i32, i32, i32) {
    %c0_i32 = arith.constant 0 : i32
    return %arg0, %arg1, %arg2 : i32, i32, i32
  }
}

</mosaic_0001>

<bundles_post_ra>
// kernel: _attention_pallas.1
= control target key start
LH: loop header
LB: loop body
LE: loop exit
PB: predicated region body
PF: predicated region fallthrough
CT: control target
= control target key end

     0   :  { %7 = vsyncpa [#allocation3], 0  ;;  %s249_s0 = inlined_call_operand.hbm [shape: f32[2,8,32], index: 0, kind: input, shape index: {}]   ;;  %s250_s1 = inlined_call_operand.hbm [shape: f32[2,8,32], index: 1, kind: input, shape index: {}]   ;;  %s251_s2 = inlined_call_operand.hbm [shape: f32[2,8,8], index: 2, kind: output, shape index: {}]  }
   0x1   :  { %8 = vsyncpa [#allocation6], 0 }
   0x2   :  { %9 = vsyncpa [#allocation4], 0  ;;  %s14_s11 = sshll.u32 %s249_s0, 4  ;;  %s211_s12 = smov [#allocation2]   ;;  %s15_s11 = int_to_ptr.hbm [resolvable:$true] %s14_s11 }
   0x3   :  { %s16_s13 = sshll.u32 %s211_s12, 4  ;;  %s27_s16 = sshll.u32 %s250_s1, 4  ;;  %s17_s13 = int_to_ptr.vmem [resolvable:$true] %s16_s13  ;;  %s28_s16 = int_to_ptr.hbm [resolvable:$true] %s27_s16 }
   0x4   :  { %s212_s17 = smov 128   ;;  %s213_s18 = smov 8  }
   0x5   :  { %22 = dma.hbm_to_vmem [thread:$0]  %s15_s11, 256, %s17_s13, [#allocation3], %s212_s17, %s212_s17, %s213_s18  }
   0x6   :  { %s214_s19 = smov [#allocation5]  }
   0x7   :  { %s29_s20 = sshll.u32 %s214_s19, 4  ;;  %s30_s20 = int_to_ptr.vmem [resolvable:$true] %s29_s20 }
   0x8   :  { %35 = dma.hbm_to_vmem [thread:$0]  %s28_s16, 256, %s30_s20, [#allocation6], %s212_s17, %s212_s17, %s213_s18  }
   0x9   :  { %205 = dma.done.wait [#allocation3], 256  }
   0xa   :  { %206 = vsyncadd [#allocation3], 4294967040 }
   0xb   :  { %207 = dma.done.wait [#allocation6], 256  }
   0xc   :  { %208 = vsyncadd [#allocation6], 4294967040  ;;  %vm48_vm0 = vcmask 261120   ;;  %v46_v0 = vld [vmem:[#allocation5] sm:$0xff]  ;;  %v47_v1 = vld [vmem:[#allocation5 + $0x8] sm:$0xff]  ;;  %s215_s0 = smov [#allocation7]  }
   0xd   :  { %124 = vmatpush.xpose.msk.msra.mxu0 %vm48_vm0, %v46_v0  ;;  %126 = vmatpush.xpose.msk.msra.mxu1 %vm48_vm0, %v47_v1  ;;  %v44_v2 = vld [vmem:[#allocation2] sm:$0xff]  ;;  %v45_v3 = vld [vmem:[#allocation2 + $0x8] sm:$0xff]  ;;  %s108_s1 = sshll.u32 %s215_s0, 4  ;;  %s110_s23 = sshll.u32 %s251_s2, 4  ;;  %vm101_vm1 = vcmask 64512   ;;  %s109_s1 = int_to_ptr.vmem [resolvable:$true] %s108_s1  ;;  %s111_s23 = int_to_ptr.hbm [resolvable:$true] %s110_s23 }
  0x10   :  { %125 = vmatmul.msk.f32.vlgmr.msra.gmra.mxu0 %vm48_vm0, %v44_v2  ;;  %127 = vmatmul.msk.f32.vlgmr.msra.gmra.mxu1 %vm48_vm0, %v45_v3 }
  0x8d   :  { %v72_v4 = vpop.f32.mrf.mxu0  ;;  %v98_v5 = vpop.f32.mrf.mxu1 }
  0x8e   :  { %102 = vst.msk [vmem:[#allocation7] sm:$0xff] %vm101_vm1, %v72_v4 }
  0x8f   :  { %103 = vst.msk [vmem:[#allocation7 + $0x8] sm:$0xff] %vm101_vm1, %v98_v5 }
  0x90   :  { %116 = dma.vmem_to_hbm [thread:$0]  %s109_s1, 256, %s111_s23, [#allocation4], %s212_s17, %s212_s17, %s213_s18  }
  0x91   :  { %209 = dma.done.wait [#allocation4], 256  }
  0x92   :  { %210 = vsyncadd [#allocation4], 4294967040 }
  0x93   :  { %121 = vsyncpa [#allocation3], 1 }
  0x94   :  { %122 = vsyncpa [#allocation6], 1 }
  0x95   :  { %123 = vsyncpa [#allocation4], 1 }

</bundles_post_ra>
